<compile_context>
chip_gen: v5e
topology: v5e:2x2
jax: 0.10.0
libtpu: 0.0.40
codegen_flags: <defaults>
</compile_context>

<pallas_src>
import functools

import jax
import jax.numpy as jnp
from jax import lax
from jax.experimental import pallas as pl
from jax.experimental.pallas import tpu as pltpu

EPS = 1e-5  # nn.BatchNorm2d default


def _double_conv_kernel(lhs1_ref, m1_ref, m2_ref, g1_ref, be1_ref, g2_ref, be2_ref,
                        out_ref, *, H, C):
    NH = out_ref.shape[0]          # N * H rows
    WC = out_ref.shape[1]          # W * Cout lanes (channel-packed, c fastest)
    inv_cnt = 1.0 / float(NH * (WC // C))   # 1 / (N*H*W)

    # Per-channel grouping matrices built from iota (no input DMA, one-time tiny VPU work).
    r0 = lax.broadcasted_iota(jnp.int32, (WC, C), 0)
    c0 = lax.broadcasted_iota(jnp.int32, (WC, C), 1)
    gred = (r0 % C == c0).astype(jnp.float32)            # (W*C, C): lane w*C+c -> channel c
    r1 = lax.broadcasted_iota(jnp.int32, (C, WC), 0)
    c1 = lax.broadcasted_iota(jnp.int32, (C, WC), 1)
    gexp = (c1 % C == r1).astype(jnp.float32)            # (C, W*C): channel c -> its W lanes

    def bn_scale_shift(acc, g_row, b_row):
        # Single-pass batch stats in f32 (biased variance, eps=1e-5) == torch BN training mode.
        # TODO(synk): switch to a shifted/Welford accumulation if this ever becomes a cross-grid
        # two-pass reduction.
        s1 = jnp.sum(acc, axis=0, keepdims=True)                              # (1, W*C)
        s2 = jnp.sum(acc * acc, axis=0, keepdims=True)                        # (1, W*C)
        s12 = jnp.concatenate([s1, s2], axis=0)                               # (2, W*C)
        red = jnp.dot(s12, gred, preferred_element_type=jnp.float32)          # (2, C)
        mean_c = red[0:1] * inv_cnt
        var_c = red[1:2] * inv_cnt - mean_c * mean_c
        scale_c = g_row * lax.rsqrt(var_c + EPS)                              # (1, C)
        shift_c = b_row - mean_c * scale_c                                    # (1, C)
        ss = jnp.concatenate([scale_c, shift_c], axis=0)                      # (2, C)
        ssl = jnp.dot(ss, gexp, preferred_element_type=jnp.float32)           # (2, W*C)
        return ssl[0:1], ssl[1:2]

    # ---- conv1: one K-fused banded matmul (conv bias cancels against the BN batch mean) ----
    acc1 = jnp.dot(lhs1_ref[...], m1_ref[...], preferred_element_type=jnp.float32)   # (NH, W*Cmid)
    sc1, sh1 = bn_scale_shift(acc1, g1_ref[...], be1_ref[...])
    t1 = jnp.tanh(acc1 * sc1 + sh1)                                           # f32, (NH, W*Cmid)

    # ---- conv2: vertical taps via XLU roll + boundary-row masks, one K-fused matmul ----
    rows = lax.broadcasted_iota(jnp.int32, (NH, 1), 0)
    not_top = (rows % H != 0).astype(jnp.float32)        # h == 0     -> tap above is zero padding
    not_bot = (rows % H != H - 1).astype(jnp.float32)    # h == H - 1 -> tap below is zero padding
    up = pltpu.roll(t1, 1, 0) * not_top                  # row h-1  (ky = 0)
    down = pltpu.roll(t1, NH - 1, 0) * not_bot           # row h+1  (ky = 2)
    m2 = m2_ref[...]
    lhs2 = jnp.concatenate([up, t1, down], axis=-1).astype(m2.dtype)          # (NH, 3*W*Cmid)
    acc2 = jnp.dot(lhs2, m2, preferred_element_type=jnp.float32)              # (NH, W*Cout)

    sc2, sh2 = bn_scale_shift(acc2, g2_ref[...], be2_ref[...])
    out_ref[...] = jnp.tanh(acc2 * sc2 + sh2).astype(out_ref.dtype)


def fused_band_matrix(wt, W, dtype):
    """Fold a 3x3 OIHW conv weight into one K-fused banded matrix.

    M[ky*W*Cin + wi*Cin + ci, wo*Cout + co] = wt[co, ci, ky, wi - wo + 1] if |wi - wo| <= 1 else 0.
    The band structure also encodes the horizontal zero padding (out-of-range taps dropped);
    the ky stacking along K matches the LHS built as [row h-1 | row h | row h+1].
    """
    Cout_, Cin_ = wt.shape[0], wt.shape[1]
    wi = jnp.arange(W)[:, None]
    wo = jnp.arange(W)[None, :]
    d = wi - wo + 1                                                   # kx tap index
    valid = ((d >= 0) & (d <= 2)).astype(wt.dtype)                    # (W, W)
    dcl = jnp.clip(d, 0, 2)
    wt_k = jnp.transpose(wt, (2, 3, 1, 0))                            # (ky, kx, Cin, Cout)
    blocks = wt_k[:, dcl] * valid[None, :, :, None, None]             # (3, Wi, Wo, Cin, Cout)
    m = jnp.transpose(blocks, (0, 1, 3, 2, 4)).reshape(3 * W * Cin_, W * Cout_)
    return m.astype(dtype)


def double_conv(x_nchw, params, matmul_dtype=jnp.bfloat16):
    """NCHW in / NCHW out.  params in PyTorch shapes (conv OIHW + bias, BN gamma/beta)."""
    w1, b1, g1, be1, w2, b2, g2, be2 = params
    del b1, b2  # conv biases cancel exactly against the training-mode BN mean subtraction
    N, Cin, H, W = x_nchw.shape
    Cmid = w1.shape[0]
    Cout = w2.shape[0]
    assert Cmid == Cout, "DoubleConv: both blocks share out_channels"

    # Layout plumbing (wrapper-side): NCHW -> channel-packed rows, vertical taps K-concatenated.
    x = jnp.transpose(x_nchw, (0, 2, 3, 1)).astype(jnp.float32)       # NHWC
    xp = jnp.pad(x, ((0, 0), (1, 1), (0, 0), (0, 0))).reshape(N, H + 2, W * Cin)
    lhs1 = jnp.concatenate([xp[:, 0:H], xp[:, 1:H + 1], xp[:, 2:H + 2]], axis=-1)
    lhs1 = lhs1.reshape(N * H, 3 * W * Cin).astype(matmul_dtype)      # (N*H, 3*W*Cin)

    m1 = fused_band_matrix(w1.astype(jnp.float32), W, matmul_dtype)   # (3*W*Cin,  W*Cmid)
    m2 = fused_band_matrix(w2.astype(jnp.float32), W, matmul_dtype)   # (3*W*Cmid, W*Cout)
    bn = lambda v: v.reshape(1, -1).astype(jnp.float32)

    itemsize = jnp.dtype(matmul_dtype).itemsize
    flops = (2 * N * H * (3 * W * Cin) * (W * Cmid)
             + 2 * N * H * (3 * W * Cmid) * (W * Cout)
             + 4 * (2 * 2 * W * Cout * Cout))                         # conv1 + conv2 + BN helpers
    transcendentals = 2 * N * H * W * Cout + 2 * Cout                 # tanh + rsqrt
    bytes_accessed = ((lhs1.size + m1.size + m2.size) * itemsize
                      + 4 * Cout * 4 + N * H * W * Cout * 4)

    vmem = pl.BlockSpec(memory_space=pltpu.MemorySpace.VMEM)
    kernel = functools.partial(_double_conv_kernel, H=H, C=Cout)
    out_packed = pl.pallas_call(
        kernel,
        out_shape=jax.ShapeDtypeStruct((N * H, W * Cout), jnp.float32),
        in_specs=[vmem] * 7,
        out_specs=vmem,
        cost_estimate=pl.CostEstimate(flops=flops, transcendentals=transcendentals,
                                      bytes_accessed=bytes_accessed),
    )(lhs1, m1, m2, bn(g1), bn(be1), bn(g2), bn(be2))

    return jnp.transpose(out_packed.reshape(N, H, W, Cout), (0, 3, 1, 2))     # NCHW


def reference(x, params):
    """Pure-JAX reference mirroring the PyTorch module (training-mode BN, with conv bias)."""
    w1, b1, g1, be1, w2, b2, g2, be2 = params

    def block(x, w, b, g, be):
        y = lax.conv_general_dilated(x, w, (1, 1), ((1, 1), (1, 1)),
                                     dimension_numbers=('NCHW', 'OIHW', 'NCHW'))
        y = y + b[None, :, None, None]
        mean = jnp.mean(y, axis=(0, 2, 3), keepdims=True)
        var = jnp.mean((y - mean) ** 2, axis=(0, 2, 3), keepdims=True)
        y = (y - mean) * lax.rsqrt(var + EPS)
        y = y * g[None, :, None, None] + be[None, :, None, None]
        return jnp.tanh(y)

    x = block(x, w1, b1, g1, be1)
    x = block(x, w2, b2, g2, be2)
    return x


if __name__ == "__main__":
    # Small shapes consistent with the module: NCHW input, 3x3 kernels, pad=1.
    N, Cin, Cout, H, W = 2, 4, 8, 16, 16

    key = jax.random.PRNGKey(0)
    ks = jax.random.split(key, 9)
    x = jax.random.normal(ks[0], (N, Cin, H, W), jnp.float32)

    # Deterministic synthetic parameters (PyTorch shapes: conv OIHW + bias, BN per-channel).
    w1 = 0.2 * jax.random.normal(ks[1], (Cout, Cin, 3, 3), jnp.float32)
    b1 = 0.1 * jax.random.normal(ks[2], (Cout,), jnp.float32)
    g1 = 1.0 + 0.1 * jax.random.normal(ks[3], (Cout,), jnp.float32)
    be1 = 0.1 * jax.random.normal(ks[4], (Cout,), jnp.float32)
    w2 = 0.2 * jax.random.normal(ks[5], (Cout, Cout, 3, 3), jnp.float32)
    b2 = 0.1 * jax.random.normal(ks[6], (Cout,), jnp.float32)
    g2 = 1.0 + 0.1 * jax.random.normal(ks[7], (Cout,), jnp.float32)
    be2 = 0.1 * jax.random.normal(ks[8], (Cout,), jnp.float32)
    params = (w1, b1, g1, be1, w2, b2, g2, be2)

    ref = jax.block_until_ready(reference(x, params))

    # Structural exactness check: f32 MXU operands must match the conv/BN/tanh reference tightly.
    out_f32 = jax.block_until_ready(
        jax.jit(functools.partial(double_conv, matmul_dtype=jnp.float32))(x, params))
    assert out_f32.shape == (N, Cout, H, W), out_f32.shape
    err_f32 = float(jnp.max(jnp.abs(out_f32 - ref)))
    assert jnp.allclose(out_f32, ref, atol=1e-3, rtol=1e-3), err_f32

    # Production path (per perf review): bf16 MXU operands, f32 accumulation / BN stats / tanh.
    # Looser tolerance reflects bf16 operand rounding only (accumulation stays f32).
    out = jax.block_until_ready(jax.jit(double_conv)(x, params))
    assert out.shape == (N, Cout, H, W), out.shape
    err_bf16 = float(jnp.max(jnp.abs(out - ref)))
    assert jnp.allclose(out, ref, atol=2e-2, rtol=2e-2), err_bf16

    print("KERNEL_OK")
</pallas_src>

<mosaic_0001>
module attributes {stable_mosaic.version = 11 : i64} {
  func.func @_double_conv_kernel(%arg0: memref<32x192xf32, #tpu.memory_space<vmem>>, %arg1: memref<192x128xf32, #tpu.memory_space<vmem>>, %arg2: memref<384x128xf32, #tpu.memory_space<vmem>>, %arg3: memref<1x8xf32, #tpu.memory_space<vmem>>, %arg4: memref<1x8xf32, #tpu.memory_space<vmem>>, %arg5: memref<1x8xf32, #tpu.memory_space<vmem>>, %arg6: memref<1x8xf32, #tpu.memory_space<vmem>>, %arg7: memref<32x128xf32, #tpu.memory_space<vmem>>) attributes {dimension_semantics = [], scalar_prefetch = 0 : i64, scratch_operands = 0 : i64, tpu.core_type = #tpu.core_type<tc>} {
    %0 = tpu.iota {dimensions = array<i32: 0>} : vector<128x8xi32>
    %1 = tpu.iota {dimensions = array<i32: 1>} : vector<128x8xi32>
    %c8_i32 = arith.constant 8 : i32
    %c0_i32 = arith.constant 0 : i32
    %2 = arith.cmpi eq, %c8_i32, %c0_i32 : i32
    %c1_i32 = arith.constant 1 : i32
    %3 = arith.select %2, %c1_i32, %c8_i32 : i32
    %4 = vector.broadcast %3 : i32 to vector<128x8xi32>
    %5 = arith.remsi %0, %4 : vector<128x8xi32>
    %c0_i32_0 = arith.constant 0 : i32
    %6 = vector.broadcast %c0_i32_0 : i32 to vector<128x8xi32>
    %7 = arith.cmpi ne, %5, %6 : vector<128x8xi32>
    %c0_i32_1 = arith.constant 0 : i32
    %8 = vector.broadcast %c0_i32_1 : i32 to vector<128x8xi32>
    %9 = arith.cmpi slt, %5, %8 : vector<128x8xi32>
    %c0_i32_2 = arith.constant 0 : i32
    %10 = arith.cmpi slt, %3, %c0_i32_2 : i32
    %11 = vector.broadcast %10 : i1 to vector<128x8xi1>
    %12 = vector.broadcast %11 : vector<128x8xi1> to vector<128x8xi1>
    %13 = arith.xori %9, %12 : vector<128x8xi1>
    %14 = arith.andi %13, %7 : vector<128x8xi1>
    %15 = vector.broadcast %3 : i32 to vector<128x8xi32>
    %16 = arith.addi %5, %15 : vector<128x8xi32>
    %17 = arith.select %14, %16, %5 : vector<128x8xi1>, vector<128x8xi32>
    %18 = arith.cmpi eq, %17, %1 : vector<128x8xi32>
    %19 = arith.extui %18 : vector<128x8xi1> to vector<128x8xi32>
    %20 = arith.sitofp %19 : vector<128x8xi32> to vector<128x8xf32>
    %21 = tpu.iota {dimensions = array<i32: 0>} : vector<8x128xi32>
    %22 = tpu.iota {dimensions = array<i32: 1>} : vector<8x128xi32>
    %c8_i32_3 = arith.constant 8 : i32
    %c0_i32_4 = arith.constant 0 : i32
    %23 = arith.cmpi eq, %c8_i32_3, %c0_i32_4 : i32
    %c1_i32_5 = arith.constant 1 : i32
    %24 = arith.select %23, %c1_i32_5, %c8_i32_3 : i32
    %25 = vector.broadcast %24 : i32 to vector<8x128xi32>
    %26 = arith.remsi %22, %25 : vector<8x128xi32>
    %c0_i32_6 = arith.constant 0 : i32
    %27 = vector.broadcast %c0_i32_6 : i32 to vector<8x128xi32>
    %28 = arith.cmpi ne, %26, %27 : vector<8x128xi32>
    %c0_i32_7 = arith.constant 0 : i32
    %29 = vector.broadcast %c0_i32_7 : i32 to vector<8x128xi32>
    %30 = arith.cmpi slt, %26, %29 : vector<8x128xi32>
    %c0_i32_8 = arith.constant 0 : i32
    %31 = arith.cmpi slt, %24, %c0_i32_8 : i32
    %32 = vector.broadcast %31 : i1 to vector<8x128xi1>
    %33 = vector.broadcast %32 : vector<8x128xi1> to vector<8x128xi1>
    %34 = arith.xori %30, %33 : vector<8x128xi1>
    %35 = arith.andi %34, %28 : vector<8x128xi1>
    %36 = vector.broadcast %24 : i32 to vector<8x128xi32>
    %37 = arith.addi %26, %36 : vector<8x128xi32>
    %38 = arith.select %35, %37, %26 : vector<8x128xi1>, vector<8x128xi32>
    %39 = arith.cmpi eq, %38, %21 : vector<8x128xi32>
    %40 = arith.extui %39 : vector<8x128xi1> to vector<8x128xi32>
    %41 = arith.sitofp %40 : vector<8x128xi32> to vector<8x128xf32>
    %c0 = arith.constant 0 : index
    %c0_9 = arith.constant 0 : index
    %42 = vector.load %arg0[%c0, %c0_9] : memref<32x192xf32, #tpu.memory_space<vmem>>, vector<32x192xf32>
    %c0_10 = arith.constant 0 : index
    %c0_11 = arith.constant 0 : index
    %43 = vector.load %arg1[%c0_10, %c0_11] : memref<192x128xf32, #tpu.memory_space<vmem>>, vector<192x128xf32>
    %cst = arith.constant dense<0.000000e+00> : vector<32x128xf32>
    %44 = tpu.matmul %42, %43, %cst {dimension_numbers = #tpu.dot_dimension_numbers<[1], [0], [0], [1], [0, 0, 1, 1], [], []>} : vector<32x192xf32>, vector<192x128xf32>, vector<32x128xf32> -> vector<32x128xf32>
    %c0_12 = arith.constant 0 : index
    %c0_13 = arith.constant 0 : index
    %45 = vector.load %arg3[%c0_12, %c0_13] : memref<1x8xf32, #tpu.memory_space<vmem>>, vector<1x8xf32>
    %c0_14 = arith.constant 0 : index
    %c0_15 = arith.constant 0 : index
    %46 = vector.load %arg4[%c0_14, %c0_15] : memref<1x8xf32, #tpu.memory_space<vmem>>, vector<1x8xf32>
    %cst_16 = arith.constant dense<0.000000e+00> : vector<128xf32>
    %47 = vector.multi_reduction <add>, %44, %cst_16 [0] : vector<32x128xf32> to vector<128xf32>
    %48 = vector.shape_cast %47 : vector<128xf32> to vector<1x128xf32>
    %49 = arith.mulf %44, %44 : vector<32x128xf32>
    %cst_17 = arith.constant dense<0.000000e+00> : vector<128xf32>
    %50 = vector.multi_reduction <add>, %49, %cst_17 [0] : vector<32x128xf32> to vector<128xf32>
    %51 = vector.shape_cast %50 : vector<128xf32> to vector<1x128xf32>
    %52 = tpu.concatenate %48, %51 in 0 : vector<1x128xf32>, vector<1x128xf32> -> vector<2x128xf32>
    %cst_18 = arith.constant dense<0.000000e+00> : vector<2x8xf32>
    %53 = tpu.matmul %52, %20, %cst_18 {dimension_numbers = #tpu.dot_dimension_numbers<[1], [0], [0], [1], [0, 0, 1, 1], [], []>} : vector<2x128xf32>, vector<128x8xf32>, vector<2x8xf32> -> vector<2x8xf32>
    %54 = vector.extract_strided_slice %53 {offsets = [0, 0], sizes = [1, 8], strides = [1, 1]} : vector<2x8xf32> to vector<1x8xf32>
    %cst_19 = arith.constant 0.001953125 : f32
    %55 = vector.broadcast %cst_19 : f32 to vector<1x8xf32>
    %56 = arith.mulf %54, %55 : vector<1x8xf32>
    %57 = vector.extract_strided_slice %53 {offsets = [1, 0], sizes = [1, 8], strides = [1, 1]} : vector<2x8xf32> to vector<1x8xf32>
    %cst_20 = arith.constant 0.001953125 : f32
    %58 = vector.broadcast %cst_20 : f32 to vector<1x8xf32>
    %59 = arith.mulf %57, %58 : vector<1x8xf32>
    %60 = arith.mulf %56, %56 : vector<1x8xf32>
    %61 = arith.subf %59, %60 : vector<1x8xf32>
    %cst_21 = arith.constant 9.99999974E-6 : f32
    %62 = vector.broadcast %cst_21 : f32 to vector<1x8xf32>
    %63 = arith.addf %61, %62 : vector<1x8xf32>
    %64 = math.rsqrt %63 : vector<1x8xf32>
    %65 = arith.mulf %45, %64 : vector<1x8xf32>
    %66 = arith.mulf %56, %65 : vector<1x8xf32>
    %67 = arith.subf %46, %66 : vector<1x8xf32>
    %68 = tpu.concatenate %65, %67 in 0 : vector<1x8xf32>, vector<1x8xf32> -> vector<2x8xf32>
    %cst_22 = arith.constant dense<0.000000e+00> : vector<2x128xf32>
    %69 = tpu.matmul %68, %41, %cst_22 {dimension_numbers = #tpu.dot_dimension_numbers<[1], [0], [0], [1], [0, 0, 1, 1], [], []>} : vector<2x8xf32>, vector<8x128xf32>, vector<2x128xf32> -> vector<2x128xf32>
    %70 = vector.extract_strided_slice %69 {offsets = [0, 0], sizes = [1, 128], strides = [1, 1]} : vector<2x128xf32> to vector<1x128xf32>
    %71 = vector.extract_strided_slice %69 {offsets = [1, 0], sizes = [1, 128], strides = [1, 1]} : vector<2x128xf32> to vector<1x128xf32>
    %72 = vector.broadcast %70 : vector<1x128xf32> to vector<32x128xf32>
    %73 = arith.mulf %44, %72 : vector<32x128xf32>
    %74 = vector.broadcast %71 : vector<1x128xf32> to vector<32x128xf32>
    %75 = arith.addf %73, %74 : vector<32x128xf32>
    %76 = math.tanh %75 : vector<32x128xf32>
    %77 = tpu.iota {dimensions = array<i32: 0>} : vector<32x1xi32>
    %c16_i32 = arith.constant 16 : i32
    %c0_i32_23 = arith.constant 0 : i32
    %78 = arith.cmpi eq, %c16_i32, %c0_i32_23 : i32
    %c1_i32_24 = arith.constant 1 : i32
    %79 = arith.select %78, %c1_i32_24, %c16_i32 : i32
    %80 = vector.broadcast %79 : i32 to vector<32x1xi32>
    %81 = arith.remsi %77, %80 : vector<32x1xi32>
    %c0_i32_25 = arith.constant 0 : i32
    %82 = vector.broadcast %c0_i32_25 : i32 to vector<32x1xi32>
    %83 = arith.cmpi ne, %81, %82 : vector<32x1xi32>
    %c0_i32_26 = arith.constant 0 : i32
    %84 = vector.broadcast %c0_i32_26 : i32 to vector<32x1xi32>
    %85 = arith.cmpi slt, %81, %84 : vector<32x1xi32>
    %c0_i32_27 = arith.constant 0 : i32
    %86 = arith.cmpi slt, %79, %c0_i32_27 : i32
    %87 = vector.broadcast %86 : i1 to vector<32x1xi1>
    %88 = vector.broadcast %87 : vector<32x1xi1> to vector<32x1xi1>
    %89 = arith.xori %85, %88 : vector<32x1xi1>
    %90 = arith.andi %89, %83 : vector<32x1xi1>
    %91 = vector.broadcast %79 : i32 to vector<32x1xi32>
    %92 = arith.addi %81, %91 : vector<32x1xi32>
    %93 = arith.select %90, %92, %81 : vector<32x1xi1>, vector<32x1xi32>
    %c0_i32_28 = arith.constant 0 : i32
    %94 = vector.broadcast %c0_i32_28 : i32 to vector<32x1xi32>
    %95 = arith.cmpi ne, %93, %94 : vector<32x1xi32>
    %96 = arith.extui %95 : vector<32x1xi1> to vector<32x1xi32>
    %97 = arith.sitofp %96 : vector<32x1xi32> to vector<32x1xf32>
    %c16_i32_29 = arith.constant 16 : i32
    %c0_i32_30 = arith.constant 0 : i32
    %98 = arith.cmpi eq, %c16_i32_29, %c0_i32_30 : i32
    %c1_i32_31 = arith.constant 1 : i32
    %99 = arith.select %98, %c1_i32_31, %c16_i32_29 : i32
    %100 = vector.broadcast %99 : i32 to vector<32x1xi32>
    %101 = arith.remsi %77, %100 : vector<32x1xi32>
    %c0_i32_32 = arith.constant 0 : i32
    %102 = vector.broadcast %c0_i32_32 : i32 to vector<32x1xi32>
    %103 = arith.cmpi ne, %101, %102 : vector<32x1xi32>
    %c0_i32_33 = arith.constant 0 : i32
    %104 = vector.broadcast %c0_i32_33 : i32 to vector<32x1xi32>
    %105 = arith.cmpi slt, %101, %104 : vector<32x1xi32>
    %c0_i32_34 = arith.constant 0 : i32
    %106 = arith.cmpi slt, %99, %c0_i32_34 : i32
    %107 = vector.broadcast %106 : i1 to vector<32x1xi1>
    %108 = vector.broadcast %107 : vector<32x1xi1> to vector<32x1xi1>
    %109 = arith.xori %105, %108 : vector<32x1xi1>
    %110 = arith.andi %109, %103 : vector<32x1xi1>
    %111 = vector.broadcast %99 : i32 to vector<32x1xi32>
    %112 = arith.addi %101, %111 : vector<32x1xi32>
    %113 = arith.select %110, %112, %101 : vector<32x1xi1>, vector<32x1xi32>
    %c15_i32 = arith.constant 15 : i32
    %114 = vector.broadcast %c15_i32 : i32 to vector<32x1xi32>
    %115 = arith.cmpi ne, %113, %114 : vector<32x1xi32>
    %116 = arith.extui %115 : vector<32x1xi1> to vector<32x1xi32>
    %117 = arith.sitofp %116 : vector<32x1xi32> to vector<32x1xf32>
    %c1_i32_35 = arith.constant 1 : i32
    %118 = tpu.dynamic_rotate %76 by %c1_i32_35 dim 0 : vector<32x128xf32>, i32 -> vector<32x128xf32>
    %119 = vector.broadcast %97 : vector<32x1xf32> to vector<32x128xf32>
    %120 = arith.mulf %118, %119 : vector<32x128xf32>
    %c31_i32 = arith.constant 31 : i32
    %121 = tpu.dynamic_rotate %76 by %c31_i32 dim 0 : vector<32x128xf32>, i32 -> vector<32x128xf32>
    %122 = vector.broadcast %117 : vector<32x1xf32> to vector<32x128xf32>
    %123 = arith.mulf %121, %122 : vector<32x128xf32>
    %c0_36 = arith.constant 0 : index
    %c0_37 = arith.constant 0 : index
    %124 = vector.load %arg2[%c0_36, %c0_37] : memref<384x128xf32, #tpu.memory_space<vmem>>, vector<384x128xf32>
    %125 = tpu.concatenate %120, %76, %123 in 1 : vector<32x128xf32>, vector<32x128xf32>, vector<32x128xf32> -> vector<32x384xf32>
    %cst_38 = arith.constant dense<0.000000e+00> : vector<32x128xf32>
    %126 = tpu.matmul %125, %124, %cst_38 {dimension_numbers = #tpu.dot_dimension_numbers<[1], [0], [0], [1], [0, 0, 1, 1], [], []>} : vector<32x384xf32>, vector<384x128xf32>, vector<32x128xf32> -> vector<32x128xf32>
    %c0_39 = arith.constant 0 : index
    %c0_40 = arith.constant 0 : index
    %127 = vector.load %arg5[%c0_39, %c0_40] : memref<1x8xf32, #tpu.memory_space<vmem>>, vector<1x8xf32>
    %c0_41 = arith.constant 0 : index
    %c0_42 = arith.constant 0 : index
    %128 = vector.load %arg6[%c0_41, %c0_42] : memref<1x8xf32, #tpu.memory_space<vmem>>, vector<1x8xf32>
    %cst_43 = arith.constant dense<0.000000e+00> : vector<128xf32>
    %129 = vector.multi_reduction <add>, %126, %cst_43 [0] : vector<32x128xf32> to vector<128xf32>
    %130 = vector.shape_cast %129 : vector<128xf32> to vector<1x128xf32>
    %131 = arith.mulf %126, %126 : vector<32x128xf32>
    %cst_44 = arith.constant dense<0.000000e+00> : vector<128xf32>
    %132 = vector.multi_reduction <add>, %131, %cst_44 [0] : vector<32x128xf32> to vector<128xf32>
    %133 = vector.shape_cast %132 : vector<128xf32> to vector<1x128xf32>
    %134 = tpu.concatenate %130, %133 in 0 : vector<1x128xf32>, vector<1x128xf32> -> vector<2x128xf32>
    %cst_45 = arith.constant dense<0.000000e+00> : vector<2x8xf32>
    %135 = tpu.matmul %134, %20, %cst_45 {dimension_numbers = #tpu.dot_dimension_numbers<[1], [0], [0], [1], [0, 0, 1, 1], [], []>} : vector<2x128xf32>, vector<128x8xf32>, vector<2x8xf32> -> vector<2x8xf32>
    %136 = vector.extract_strided_slice %135 {offsets = [0, 0], sizes = [1, 8], strides = [1, 1]} : vector<2x8xf32> to vector<1x8xf32>
    %cst_46 = arith.constant 0.001953125 : f32
    %137 = vector.broadcast %cst_46 : f32 to vector<1x8xf32>
    %138 = arith.mulf %136, %137 : vector<1x8xf32>
    %139 = vector.extract_strided_slice %135 {offsets = [1, 0], sizes = [1, 8], strides = [1, 1]} : vector<2x8xf32> to vector<1x8xf32>
    %cst_47 = arith.constant 0.001953125 : f32
    %140 = vector.broadcast %cst_47 : f32 to vector<1x8xf32>
    %141 = arith.mulf %139, %140 : vector<1x8xf32>
    %142 = arith.mulf %138, %138 : vector<1x8xf32>
    %143 = arith.subf %141, %142 : vector<1x8xf32>
    %cst_48 = arith.constant 9.99999974E-6 : f32
    %144 = vector.broadcast %cst_48 : f32 to vector<1x8xf32>
    %145 = arith.addf %143, %144 : vector<1x8xf32>
    %146 = math.rsqrt %145 : vector<1x8xf32>
    %147 = arith.mulf %127, %146 : vector<1x8xf32>
    %148 = arith.mulf %138, %147 : vector<1x8xf32>
    %149 = arith.subf %128, %148 : vector<1x8xf32>
    %150 = tpu.concatenate %147, %149 in 0 : vector<1x8xf32>, vector<1x8xf32> -> vector<2x8xf32>
    %cst_49 = arith.constant dense<0.000000e+00> : vector<2x128xf32>
    %151 = tpu.matmul %150, %41, %cst_49 {dimension_numbers = #tpu.dot_dimension_numbers<[1], [0], [0], [1], [0, 0, 1, 1], [], []>} : vector<2x8xf32>, vector<8x128xf32>, vector<2x128xf32> -> vector<2x128xf32>
    %152 = vector.extract_strided_slice %151 {offsets = [0, 0], sizes = [1, 128], strides = [1, 1]} : vector<2x128xf32> to vector<1x128xf32>
    %153 = vector.extract_strided_slice %151 {offsets = [1, 0], sizes = [1, 128], strides = [1, 1]} : vector<2x128xf32> to vector<1x128xf32>
    %154 = vector.broadcast %152 : vector<1x128xf32> to vector<32x128xf32>
    %155 = arith.mulf %126, %154 : vector<32x128xf32>
    %156 = vector.broadcast %153 : vector<1x128xf32> to vector<32x128xf32>
    %157 = arith.addf %155, %156 : vector<32x128xf32>
    %158 = math.tanh %157 : vector<32x128xf32>
    %c0_50 = arith.constant 0 : index
    %c0_51 = arith.constant 0 : index
    %159 = vector.load %arg7[%c0_50, %c0_51] : memref<32x128xf32, #tpu.memory_space<vmem>>, vector<32x128xf32>
    tpu.vector_store %arg7[%c0_50, %c0_51], %158 {strides = array<i32>} : memref<32x128xf32, #tpu.memory_space<vmem>>, vector<32x128xf32>,
    return
  }
}

</mosaic_0001>

<bundles_post_ra>
// kernel: double_conv.1
= control target key start
LH: loop header
LB: loop body
LE: loop exit
PB: predicated region body
PF: predicated region fallthrough
CT: control target
= control target key end

     0   :  { %vm332_vm0 = vcmask 523264   ;;  %v26_v32 = vlaneseq  ;;  %v951_v41 = vmov 1.0   ;;  %s1554_s1 = inlined_call_operand.vmem [shape: f32[192,128], index: 1, kind: input, shape index: {}]   ;;  %s1555_s0 = inlined_call_operand.vmem [shape: f32[32,192], index: 0, kind: input, shape index: {}]   ;;  %s1556_s2 = inlined_call_operand.vmem [shape: f32[384,128], index: 2, kind: input, shape index: {}]   ;;  %s1557_s3 = inlined_call_operand.vmem [shape: f32[1,8], index: 3, kind: input, shape index: {}]   ;;  %s1558_s4 = inlined_call_operand.vmem [shape: f32[1,8], index: 4, kind: input, shape index: {}]   ;;  %s1559_s5 = inlined_call_operand.vmem [shape: f32[1,8], index: 5, kind: input, shape index: {}]   ;;  %s1560_s6 = inlined_call_operand.vmem [shape: f32[1,8], index: 6, kind: input, shape index: {}]   ;;  %s1561_s7 = inlined_call_operand.vmem [shape: f32[32,128], index: 7, kind: output, shape index: {}]  }
   0x1   :  { %v323_v0 = vld [vmem:[%s1554_s1 + $0x78] sm:$0xff]  ;;  %v322_v1 = vld [vmem:[%s1554_s1 + $0x70] sm:$0xff]  ;;  %v321_v2 = vld [vmem:[%s1554_s1 + $0x68] sm:$0xff] }
   0x2   :  { %345 = vmatpush.msra.mxu0 %v323_v0  ;;  %v331_v3 = vld [vmem:[%s1554_s1 + $0xb8] sm:$0xff]  ;;  %v330_v4 = vld [vmem:[%s1554_s1 + $0xb0] sm:$0xff]  ;;  %v320_v5 = vld [vmem:[%s1554_s1 + $0x60] sm:$0xff]  ;;  %v1093_v33 = vshrl.u32 %v26_v32, 7  ;;  %v1096_v35 = vand.u32 127, %v26_v32 }
   0x3   :  { %382 = vmatpush.msra.mxu1 %v331_v3  ;;  %v329_v6 = vld [vmem:[%s1554_s1 + $0xa8] sm:$0xff]  ;;  %v319_v7 = vld [vmem:[%s1554_s1 + $0x58] sm:$0xff]  ;;  %v328_v8 = vld [vmem:[%s1554_s1 + $0xa0] sm:$0xff] }
   0x4   :  { %346 = vmatpush.msra.mxu0 %v322_v1  ;;  %v318_v9 = vld [vmem:[%s1554_s1 + $0x50] sm:$0xff]  ;;  %v327_v10 = vld [vmem:[%s1554_s1 + $0x98] sm:$0xff]  ;;  %v317_v11 = vld [vmem:[%s1554_s1 + $0x48] sm:$0xff]  ;;  %v42_v34 = vadd.s32 120, %v1093_v33  ;;  %v41_v37 = vadd.s32 112, %v1093_v33  ;;  %v40_v40 = vadd.s32 104, %v1093_v33 }
   0x5   :  { %383 = vmatpush.msra.mxu1 %v330_v4  ;;  %v326_v12 = vld [vmem:[%s1554_s1 + $0x90] sm:$0xff]  ;;  %v316_v13 = vld [vmem:[%s1554_s1 + $0x40] sm:$0xff]  ;;  %v325_v14 = vld [vmem:[%s1554_s1 + $0x88] sm:$0xff]  ;;  %v39_v44 = vadd.s32 96, %v1093_v33  ;;  %v38_v47 = vadd.s32 88, %v1093_v33  ;;  %v37_v50 = vadd.s32 80, %v1093_v33 }
   0x6   :  { %347 = vmatpush.msra.mxu0 %v321_v2  ;;  %v315_v15 = vld [vmem:[%s1554_s1 + $0x38] sm:$0xff]  ;;  %v324_v16 = vld [vmem:[%s1554_s1 + $0x80] sm:$0xff]  ;;  %v314_v17 = vld [vmem:[%s1554_s1 + $0x30] sm:$0xff]  ;;  %v154_v36 = vand.u32 7, %v42_v34  ;;  %v147_v39 = vand.u32 7, %v41_v37  ;;  %v140_v43 = vand.u32 7, %v40_v40 }
   0x7   :  { %384 = vmatpush.msra.mxu1 %v329_v6  ;;  %v301_v18 = vld [vmem:[%s1555_s0 + $0x8] sm:$0xff]  ;;  %v312_v20 = vld [vmem:[%s1554_s1 + $0x20] sm:$0xff]  ;;  %v311_v21 = vld [vmem:[%s1554_s1 + $0x18] sm:$0xff]  ;;  %v133_v46 = vand.u32 7, %v39_v44  ;;  %v126_v49 = vand.u32 7, %v38_v47  ;;  %v119_v52 = vand.u32 7, %v37_v50 }
   0x8   :  { %348 = vmatpush.msra.mxu0 %v320_v5  ;;  %v313_v19 = vld [vmem:[%s1554_s1 + $0x28] sm:$0xff]  ;;  %v310_v22 = vld [vmem:[%s1554_s1 + $0x10] sm:$0xff]  ;;  %v303_v23 = vld [vmem:[%s1555_s0 + $0x18] sm:$0xff]  ;;  %vm1100_vm1 = vcmp.eq.s32.totalorder %v154_v36, %v1096_v35  ;;  %vm1109_vm2 = vcmp.eq.s32.totalorder %v147_v39, %v1096_v35  ;;  %vm1118_vm3 = vcmp.eq.s32.totalorder %v140_v43, %v1096_v35  ;;  %v36_v53 = vadd.s32 72, %v1093_v33 }
   0x9   :  { %385 = vmatpush.msra.mxu1 %v328_v8  ;;  %v309_v24 = vld [vmem:[%s1554_s1 + $0x8] sm:$0xff]  ;;  %v308_v25 = vld [vmem:[%s1554_s1] sm:$0xff]  ;;  %v302_v28 = vld [vmem:[%s1555_s0 + $0x10] sm:$0xff]  ;;  %889 = vmatpush.msk.msra.mxu2 %vm1100_vm1, %v951_v41  ;;  %vm1127_vm4 = vcmp.eq.s32.totalorder %v133_v46, %v1096_v35  ;;  %vm1136_vm5 = vcmp.eq.s32.totalorder %v126_v49, %v1096_v35  ;;  %vm1145_vm6 = vcmp.eq.s32.totalorder %v119_v52, %v1096_v35  ;;  %v35_v56 = vadd.s32 64, %v1093_v33 }
   0xa   :  { %349 = vmatpush.msra.mxu0 %v319_v7  ;;  %v300_v26 = vld [vmem:[%s1555_s0] sm:$0xff]  ;;  %v305_v27 = vld [vmem:[%s1555_s0 + $0x28] sm:$0xff]  ;;  %v307_v29 = vld [vmem:[%s1555_s0 + $0x38] sm:$0xff]  ;;  %v112_v55 = vand.u32 7, %v36_v53  ;;  %v34_v60 = vadd.s32 56, %v1093_v33  ;;  %v33_v63 = vadd.s32 48, %v1093_v33 }
   0xb   :  { %386 = vmatpush.msra.mxu1 %v327_v10  ;;  %v304_v30 = vld [vmem:[%s1555_s0 + $0x20] sm:$0xff]  ;;  %v306_v31 = vld [vmem:[%s1555_s0 + $0x30] sm:$0xff]  ;;  %890 = vmatpush.msk.msra.mxu2 %vm1109_vm2, %v951_v41  ;;  %v105_v59 = vand.u32 7, %v35_v56  ;;  %v32_v2 = vadd.s32 40, %v1093_v33  ;;  %v31_v5 = vadd.s32 32, %v1093_v33  ;;  %v1190_v6 = vadd.s32 24, %v1093_v33 }
   0xc   :  { %350 = vmatpush.msra.mxu0 %v318_v9  ;;  %vm1154_vm7 = vcmp.eq.s32.totalorder %v112_v55, %v1096_v35  ;;  %v98_v62 = vand.u32 7, %v34_v60  ;;  %v91_v1 = vand.u32 7, %v33_v63  ;;  %v1193_v7 = vadd.s32 16, %v1093_v33  ;;  %v629_v3 = vld [vmem:[%s1556_s2 + $0x78] sm:$0xff]  ;;  %v659_v10 = vld [vmem:[%s1556_s2 + $0x168] sm:$0xff] }
   0xd   :  { %387 = vmatpush.msra.mxu1 %v326_v12  ;;  %891 = vmatpush.msk.msra.mxu2 %vm1118_vm3, %v951_v41  ;;  %vm1163_vm8 = vcmp.eq.s32.totalorder %v105_v59, %v1096_v35  ;;  %v84_v4 = vand.u32 7, %v32_v2  ;;  %v1196_v8 = vadd.s32 8, %v1093_v33  ;;  %v70_v12 = vand.u32 7, %v1190_v6  ;;  %v644_v2 = vld [vmem:[%s1556_s2 + $0xf0] sm:$0xff] }
   0xe   :  { %351 = vmatpush.msra.mxu0 %v317_v11  ;;  %vm1172_vm9 = vcmp.eq.s32.totalorder %v98_v62, %v1096_v35  ;;  %vm1181_vm10 = vcmp.eq.s32.totalorder %v91_v1, %v1096_v35  ;;  %v77_v11 = vand.u32 7, %v31_v5  ;;  %v289_v62 = vand.u32 7, %v1096_v35  ;;  %v645_v1 = vld [vmem:[%s1556_s2 + $0xf8] sm:$0xff]  ;;  %v643_v5 = vld [vmem:[%s1556_s2 + $0xe8] sm:$0xff] }
   0xf   :  { %388 = vmatpush.msra.mxu1 %v325_v14  ;;  %892 = vmatpush.msk.msra.mxu2 %vm1127_vm4, %v951_v41  ;;  %vm1199_vm11 = vcmp.eq.s32.totalorder %v84_v4, %v1096_v35  ;;  %vm1218_vm13 = vcmp.eq.s32.totalorder %v70_v12, %v1096_v35  ;;  %v660_v4 = vld [vmem:[%s1556_s2 + $0x170] sm:$0xff]  ;;  %v627_v12 = vld [vmem:[%s1556_s2 + $0x68] sm:$0xff] }
  0x10   :  { %352 = vmatpush.msra.mxu0 %v316_v13  ;;  %v63_v13 = vand.u32 7, %v1193_v7  ;;  %vm1209_vm12 = vcmp.eq.s32.totalorder %v77_v11, %v1096_v35 }
  0x11   :  { %389 = vmatpush.msra.mxu1 %v324_v16  ;;  %893 = vmatpush.msk.msra.mxu2 %vm1136_vm5, %v951_v41  ;;  %v56_v16 = vand.u32 7, %v1196_v8 }
  0x12   :  { %353 = vmatpush.msra.mxu0 %v315_v15  ;;  %885 = vmatmul.msk.f32.vlgmr.msra.gmra.mxu1 %vm332_vm0, %v301_v18  ;;  %vm1223_vm14 = vcmp.eq.s32.totalorder %v63_v13, %v1096_v35  ;;  %v658_v15 = vld [vmem:[%s1556_s2 + $0x160] sm:$0xff]  ;;  %v641_v18 = vld [vmem:[%s1556_s2 + $0xd8] sm:$0xff] }
  0x13   :  { %894 = vmatpush.msk.msra.mxu2 %vm1145_vm6, %v951_v41  ;;  %vm1232_vm15 = vcmp.eq.s32.totalorder %v56_v16, %v1096_v35  ;;  %691 = vmatpush.msrb.mxu1 %v645_v1  ;;  %v626_v16 = vld [vmem:[%s1556_s2 + $0x60] sm:$0xff]  ;;  %v631_v1 = vld [vmem:[%s1556_s2 + $0x88] sm:$0xff] }
  0x14   :  { %354 = vmatpush.msra.mxu0 %v314_v17 }
  0x15   :  { %895 = vmatpush.msk.msra.mxu2 %vm1154_vm7, %v951_v41  ;;  %692 = vmatpush.msrb.mxu1 %v644_v2  ;;  %v617_v2 = vld [vmem:[%s1556_s2 + $0x18] sm:$0xff] }
  0x16   :  { %355 = vmatpush.msra.mxu0 %v313_v19  ;;  %v49_v19 = vand.u32 7, %v1093_v33 }
  0x17   :  { %896 = vmatpush.msk.msra.mxu2 %vm1163_vm8, %v951_v41  ;;  %693 = vmatpush.msrb.mxu1 %v643_v5  ;;  %v647_v5 = vld [vmem:[%s1556_s2 + $0x108] sm:$0xff] }
  0x18   :  { %356 = vmatpush.msra.mxu0 %v312_v20  ;;  %v625_v20 = vld [vmem:[%s1556_s2 + $0x58] sm:$0xff] }
  0x19   :  { %897 = vmatpush.msk.msra.mxu2 %vm1172_vm9, %v951_v41 }
  0x1a   :  { %357 = vmatpush.msra.mxu0 %v311_v21  ;;  %886 = vmatmul.msk.f32.gmra.mxu1 %vm332_vm0, %v303_v23 }
  0x1b   :  { %898 = vmatpush.msk.msra.mxu2 %vm1181_vm10, %v951_v41 }
  0x1c   :  { %358 = vmatpush.msra.mxu0 %v310_v22  ;;  %v640_v22 = vld [vmem:[%s1556_s2 + $0xd0] sm:$0xff] }
  0x1d   :  { %899 = vmatpush.msk.msra.mxu2 %vm1199_vm11, %v951_v41 }
  0x1e   :  { %359 = vmatpush.msra.mxu0 %v309_v24 }
  0x1f   :  { %900 = vmatpush.msk.msra.mxu2 %vm1209_vm12, %v951_v41 }
  0x20   :  { %360 = vmatpush.msra.mxu0 %v308_v25 }
  0x21   :  { %361 = vmatmul.f32.vlgmr.msra.gmra.mxu0 %v300_v26  ;;  %901 = vmatpush.msk.msra.mxu2 %vm1218_vm13, %v951_v41 }
  0x22   :  { %887 = vmatmul.msk.f32.gmra.mxu1 %vm332_vm0, %v305_v27 }
  0x23   :  { %902 = vmatpush.msk.msra.mxu2 %vm1223_vm14, %v951_v41 }
  0x25   :  { %903 = vmatpush.msk.msra.mxu2 %vm1232_vm15, %v951_v41 }
  0x29   :  { %364 = vmatmul.f32.gmra.mxu0 %v302_v28 }
  0x2a   :  { %888 = vmatmul.msk.f32.gmra.mxu1 %vm332_vm0, %v307_v29  ;;  %vm1240_vm0 = vcmp.eq.s32.totalorder %v49_v19, %v1096_v35  ;;  %v661_v35 = vld [vmem:[%s1556_s2 + $0x178] sm:$0xff] }
  0x2b   :  { %904 = vmatpush.msk.msra.mxu2 %vm1240_vm0, %v951_v41  ;;  %720 = vmatpush.msrb.mxu0 %v661_v35  ;;  %v657_v19 = vld [vmem:[%s1556_s2 + $0x158] sm:$0xff]  ;;  %v648_v35 = vld [vmem:[%s1556_s2 + $0x110] sm:$0xff] }
  0x2d   :  { %911 = vmatpush.msk.msrb.mxu2 %vm1100_vm1, %v951_v41  ;;  %vm427_vm1 = vcmask 1040384   ;;  %721 = vmatpush.msrb.mxu0 %v660_v4  ;;  %v616_v4 = vld [vmem:[%s1556_s2 + $0x10] sm:$0xff] }
  0x2f   :  { %912 = vmatpush.msk.msrb.mxu2 %vm1109_vm2, %v951_v41  ;;  %vm1326_vm2 = vcmp.eq.s32.totalorder %v289_v62, %v1093_v33  ;;  %722 = vmatpush.msrb.mxu0 %v659_v10  ;;  %v618_v62 = vld [vmem:[%s1556_s2 + $0x20] sm:$0xff] }
  0x30   :  { %905 = vmatpush.msk.msra.mxu3 %vm1326_vm2, %v951_v41  ;;  %v646_v10 = vld [vmem:[%s1556_s2 + $0x100] sm:$0xff] }
  0x31   :  { %367 = vmatmul.f32.gmra.mxu0 %v304_v30  ;;  %913 = vmatpush.msk.msrb.mxu2 %vm1118_vm3, %v951_v41 }
  0x32   :  { %662 = vmatpush.msrb.mxu3 %v629_v3  ;;  %723 = vmatpush.msrb.mxu0 %v658_v15  ;;  %v630_v3 = vld [vmem:[%s1556_s2 + $0x80] sm:$0xff] }
  0x33   :  { %914 = vmatpush.msk.msrb.mxu2 %vm1127_vm4, %v951_v41 }
  0x34   :  { %724 = vmatpush.msrb.mxu0 %v657_v19 }
  0x35   :  { %915 = vmatpush.msk.msrb.mxu2 %vm1136_vm5, %v951_v41 }
  0x37   :  { %916 = vmatpush.msk.msrb.mxu2 %vm1145_vm6, %v951_v41  ;;  %vm478_vm6 = vcmask 64512  }
  0x39   :  { %370 = vmatmul.f32.gmra.mxu0 %v306_v31  ;;  %917 = vmatpush.msk.msrb.mxu2 %vm1154_vm7, %v951_v41  ;;  %vm605_vm7 = vcmp.lt.s32.totalorder %v1093_v33, 7 }
  0x3b   :  { %918 = vmatpush.msk.msrb.mxu2 %vm1163_vm8, %v951_v41 }
  0x3d   :  { %919 = vmatpush.msk.msrb.mxu2 %vm1172_vm9, %v951_v41  ;;  %vm592_vm9 = vcmp.lt.s32.totalorder %v1093_v33, 1 }
  0x3f   :  { %920 = vmatpush.msk.msrb.mxu2 %vm1181_vm10, %v951_v41 }
  0x41   :  { %921 = vmatpush.msk.msrb.mxu2 %vm1199_vm11, %v951_v41 }
  0x43   :  { %922 = vmatpush.msk.msrb.mxu2 %vm1209_vm12, %v951_v41 }
  0x45   :  { %923 = vmatpush.msk.msrb.mxu2 %vm1218_vm13, %v951_v41 }
  0x47   :  { %924 = vmatpush.msk.msrb.mxu2 %vm1223_vm14, %v951_v41 }
  0x49   :  { %925 = vmatpush.msk.msrb.mxu2 %vm1232_vm15, %v951_v41 }
  0x4b   :  { %926 = vmatpush.msk.msrb.mxu2 %vm1240_vm0, %v951_v41 }
  0x8f   :  { %v391_v57 = vpop.f32.mrf.mxu1 }
  0x97   :  { %v394_v14 = vpop.f32.mrf.mxu1 }
  0x9e   :  { %v362_v9 = vpop.f32.mrf.mxu0 }
  0x9f   :  { %v397_v23 = vpop.f32.mrf.mxu1  ;;  %v1264_v26 = vadd.f32 %v391_v57, %v362_v9  ;;  %v628_v9 = vld [vmem:[%s1556_s2 + $0x70] sm:$0xff] }
  0xa0   :  { %663 = vmatpush.msrb.mxu3 %v628_v9  ;;  %v615_v9 = vld [vmem:[%s1556_s2 + $0x8] sm:$0xff] }
  0xa1   :  { %v414_v30 = vmul.f32 %v1264_v26, %v1264_v26 }
  0xa2   :  { %664 = vmatpush.msrb.mxu3 %v627_v12 }
  0xa4   :  { %665 = vmatpush.msrb.mxu3 %v626_v16 }
  0xa6   :  { %v365_v21 = vpop.f32.mrf.mxu0  ;;  %666 = vmatpush.msrb.mxu3 %v625_v20 }
  0xa7   :  { %v1259_v25 = vadd.f32 %v394_v14, %v365_v21  ;;  %v400_v29 = vpop.f32.mrf.mxu1  ;;  %v642_v14 = vld [vmem:[%s1556_s2 + $0xe0] sm:$0xff] }
  0xa8   :  { %694 = vmatpush.msrb.mxu1 %v642_v14 }
  0xa9   :  { %v415_v28 = vmul.f32 %v1259_v25, %v1259_v25  ;;  %v405_v31 = vadd.f32 %v1259_v25, %v1264_v26 }
  0xaa   :  { %695 = vmatpush.msrb.mxu1 %v641_v18 }
  0xab   :  { %v418_v36 = vadd.f32 %v415_v28, %v414_v30  ;;  %v655_v30 = vld [vmem:[%s1556_s2 + $0x148] sm:$0xff] }
  0xac   :  { %696 = vmatpush.msrb.mxu1 %v640_v22 }
  0xae   :  { %v368_v24 = vpop.f32.mrf.mxu0 }
  0xaf   :  { %v1266_v27 = vadd.f32 %v397_v23, %v368_v24  ;;  %v656_v23 = vld [vmem:[%s1556_s2 + $0x150] sm:$0xff] }
  0xb0   :  { %v624_v24 = vld [vmem:[%s1556_s2 + $0x50] sm:$0xff]  ;;  %725 = vmatpush.msrb.mxu0 %v656_v23 }
  0xb1   :  { %v416_v32 = vmul.f32 %v1266_v27, %v1266_v27  ;;  %v406_v37 = vadd.f32 %v405_v31, %v1266_v27  ;;  %667 = vmatpush.msrb.mxu3 %v624_v24 }
  0xb2   :  { %726 = vmatpush.msrb.mxu0 %v655_v30  ;;  %v952_v30 = vmov 0.0  }
  0xb3   :  { %v419_v39 = vadd.f32 %v418_v36, %v416_v32  ;;  %v638_v32 = vld [vmem:[%s1556_s2 + $0xc0] sm:$0xff]  ;;  %v637_v36 = vld [vmem:[%s1556_s2 + $0xb8] sm:$0xff] }
  0xb6   :  { %v371_v34 = vpop.f32.mrf.mxu0 }
  0xb7   :  { %v1286_v38 = vadd.f32 %v400_v29, %v371_v34  ;;  %v639_v29 = vld [vmem:[%s1556_s2 + $0xc8] sm:$0xff] }
  0xb8   :  { %697 = vmatpush.msrb.mxu1 %v639_v29 }
  0xb9   :  { %v407_v40 = vadd.f32 %v406_v37, %v1286_v38  ;;  %v417_v42 = vmul.f32 %v1286_v38, %v1286_v38  ;;  %v403_v37 = vld [vmem:[%s1557_s3] sm:$0x1] }
  0xba   :  { %698 = vmatpush.msrb.mxu1 %v638_v32 }
  0xbb   :  { %v408_v43 = vrot.slane %v407_v40, 4  ;;  %v420_v44 = vadd.f32 %v419_v39, %v417_v42  ;;  %v404_v42 = vld [vmem:[%s1558_s4] sm:$0x1] }
  0xbc   :  { %699 = vmatpush.msrb.mxu1 %v637_v36 }
  0xbd   :  { %v409_v45 = vadd.f32 %v408_v43, %v407_v40  ;;  %v421_v46 = vrot.slane %v420_v44, 4 }
  0xbf   :  { %v410_v47 = vrot.slane %v409_v45, 2  ;;  %v422_v48 = vadd.f32 %v421_v46, %v420_v44 }
  0xc1   :  { %v411_v49 = vadd.f32 %v410_v47, %v409_v45  ;;  %v423_v50 = vrot.slane %v422_v48, 2  ;;  %v623_v47 = vld [vmem:[%s1556_s2 + $0x48] sm:$0xff] }
  0xc2   :  { %668 = vmatpush.msrb.mxu3 %v623_v47  ;;  %v541_v47 = vand.u32 15, %v1190_v6 }
  0xc3   :  { %v412_v51 = vrot.slane %v411_v49, 1  ;;  %v424_v52 = vadd.f32 %v423_v50, %v422_v48  ;;  %v654_v48 = vld [vmem:[%s1556_s2 + $0x140] sm:$0xff] }
  0xc4   :  { %727 = vmatpush.msrb.mxu0 %v654_v48  ;;  %v622_v50 = vld [vmem:[%s1556_s2 + $0x40] sm:$0xff]  ;;  %vm579_vm12 = vcmp.ne.s32.totalorder %v541_v47, 15 }
  0xc5   :  { %v425_v53 = vrot.slane %v424_v52, 1  ;;  %v413_v54 = vadd.f32 %v412_v51, %v411_v49  ;;  %v636_v49 = vld [vmem:[%s1556_s2 + $0xb0] sm:$0xff]  ;;  %v653_v51 = vld [vmem:[%s1556_s2 + $0x138] sm:$0xff]  ;;  %669 = vmatpush.msrb.mxu3 %v622_v50 }
  0xc6   :  { %700 = vmatpush.msrb.mxu1 %v636_v49  ;;  %728 = vmatpush.msrb.mxu0 %v653_v51  ;;  %v910_v51 = vsel %vm579_vm12, 1.0, %v952_v30 }
  0xc7   :  { %v426_v55 = vadd.f32 %v425_v53, %v424_v52  ;;  %v635_v52 = vld [vmem:[%s1556_s2 + $0xa8] sm:$0xff]  ;;  %v621_v53 = vld [vmem:[%s1556_s2 + $0x38] sm:$0xff] }
  0xc8   :  { %701 = vmatpush.msrb.mxu1 %v635_v52  ;;  %670 = vmatpush.msrb.mxu3 %v621_v53 }
  0xc9   :  { %v428_v56 = vsel %vm427_vm1, %v413_v54, %v426_v55  ;;  %v652_v54 = vld [vmem:[%s1556_s2 + $0x130] sm:$0xff]  ;;  %v634_v55 = vld [vmem:[%s1556_s2 + $0xa0] sm:$0xff] }
  0xca   :  { %445 = vmatmul.f32.vlgmr.msra.gmra.mxu2 %v428_v56  ;;  %729 = vmatpush.msrb.mxu0 %v652_v54  ;;  %v620_v56 = vld [vmem:[%s1556_s2 + $0x30] sm:$0xff] }
  0xcb   :  { %702 = vmatpush.msrb.mxu1 %v634_v55  ;;  %671 = vmatpush.msrb.mxu3 %v620_v56 }
 0x14d   :  { %v446_v57 = vpop.f32.mrf.mxu2 }
 0x14e   :  { %v1319_v58 = vmul.f32 0.001953125, %v446_v57  ;;  %v651_v57 = vld [vmem:[%s1556_s2 + $0x128] sm:$0xff] }
 0x14f   :  { %730 = vmatpush.msrb.mxu0 %v651_v57 }
 0x150   :  { %v450_v59 = vmul.f32 %v1319_v58, %v1319_v58 }
 0x152   :  { %v452_v60 = vrot.slane %v450_v59, 7  ;;  %v619_v59 = vld [vmem:[%s1556_s2 + $0x28] sm:$0xff] }
 0x153   :  { %672 = vmatpush.msrb.mxu3 %v619_v59 }
 0x154   :  { %v454_v61 = vsub.f32 %v1319_v58, %v452_v60  ;;  %v650_v60 = vld [vmem:[%s1556_s2 + $0x120] sm:$0xff] }
 0x155   :  { %731 = vmatpush.msrb.mxu0 %v650_v60  ;;  %673 = vmatpush.msrb.mxu3 %v618_v62 }
 0x156   :  { %v455_v63 = vadd.f32 1e-05, %v454_v61  ;;  %v632_v61 = vld [vmem:[%s1556_s2 + $0x90] sm:$0xff] }
 0x157   :  { %674 = vmatpush.msrb.mxu3 %v617_v2 }
 0x158   :  { %931 = vrsqrt.f32 %v455_v63  ;;  %vm462_vm4 = vweird.f32 %v455_v63 }
 0x159   :  { %675 = vmatpush.msrb.mxu3 %v616_v4 }
 0x15b   :  { %676 = vmatpush.msrb.mxu3 %v615_v9 }
 0x15e   :  { %v932_v11 = vpop.eup %931 }
 0x15f   :  { %v457_v13 = vmul.f32 %v932_v11, %v455_v63  ;;  %vm463_vm3 = vweird.f32 %v932_v11  ;;  %v649_v63 = vld [vmem:[%s1556_s2 + $0x118] sm:$0xff] }
 0x160   :  { %vm464_vm5 = vmor %vm462_vm4, %vm463_vm3  ;;  %732 = vmatpush.msrb.mxu0 %v649_v63 }
 0x161   :  { %v458_v17 = vmul.f32 %v932_v11, %v457_v13 }
 0x162   :  { %733 = vmatpush.msrb.mxu0 %v648_v35 }
 0x163   :  { %v459_v21 = vmul.f32 0.5, %v458_v17 }
 0x164   :  { %734 = vmatpush.msrb.mxu0 %v647_v5 }
 0x165   :  { %v460_v28 = vsub.f32 1.5, %v459_v21 }
 0x166   :  { %735 = vmatpush.msrb.mxu0 %v646_v10 }
 0x167   :  { %v461_v31 = vmul.f32 %v932_v11, %v460_v28 }
 0x169   :  { %v465_v34 = vsel %vm464_vm5, %v932_v11, %v461_v31  ;;  %v614_v11 = vld [vmem:[%s1556_s2] sm:$0xff] }
 0x16a   :  { %467 = vst [vmem:[#allocation1] sm:$0xff] %v465_v34  ;;  %677 = vmatpush.msrb.mxu3 %v614_v11 }
 0x171   :  { %v469_v39 = vld [vmem:[#allocation1 + $0x1] ss:$9 sm:$0xff] }
 0x172   :  { %v471_v40 = vmul.f32 %v469_v39, %v403_v37 }
 0x174   :  { %v472_v43 = vmul.f32 %v471_v40, %v1319_v58  ;;  %v633_v58 = vld [vmem:[%s1556_s2 + $0x98] sm:$0xff] }
 0x175   :  { %703 = vmatpush.msrb.mxu1 %v633_v58 }
 0x176   :  { %v473_v44 = vsub.f32 %v404_v42, %v472_v43  ;;  %v534_v43 = vand.u32 15, %v1193_v7 }
 0x177   :  { %704 = vmatpush.msrb.mxu1 %v632_v61 }
 0x178   :  { %v475_v45 = vperm.slane %v473_v44, 0  ;;  %vm566_vm11 = vcmp.ne.s32.totalorder %v534_v43, 0 }
 0x179   :  { %705 = vmatpush.msrb.mxu1 %v631_v1  ;;  %v908_v49 = vsel %vm566_vm11, 1.0, %v952_v30 }
 0x17a   :  { %v477_v46 = vsel %vm427_vm1, %v471_v40, %v475_v45 }
 0x17b   :  { %906 = vmatmul.msk.f32.vlgmr.msra.gmra.mxu3 %vm478_vm6, %v477_v46  ;;  %706 = vmatpush.msrb.mxu1 %v630_v3 }
 0x17c   :  { %927 = vmatpush.msk.msra.mxu3 %vm1326_vm2, %v951_v41  ;;  %v520_v41 = vand.u32 15, %v1093_v33 }
 0x17e   :  { %vm564_vm8 = vcmp.ne.s32.totalorder %v520_v41, 0 }
 0x17f   :  { %v907_v31 = vsel %vm564_vm8, 1.0, %v952_v30 }
 0x1fe   :  { %v499_v12 = vpop.f32.mrf.mxu3 }
 0x1ff   :  { %v502_v13 = vperm.slane %v499_v12, 0  ;;  %v507_v14 = vperm.slane %v499_v12, 1 }
 0x201   :  { %v503_v15 = vmul.f32 %v502_v13, %v1264_v26  ;;  %v504_v16 = vmul.f32 %v502_v13, %v1259_v25  ;;  %v505_v17 = vmul.f32 %v502_v13, %v1266_v27  ;;  %v506_v18 = vmul.f32 %v502_v13, %v1286_v38 }
 0x202   :  { %v527_v27 = vand.u32 15, %v1196_v8 }
 0x203   :  { %v508_v19 = vadd.f32 %v507_v14, %v503_v15  ;;  %v509_v20 = vadd.f32 %v507_v14, %v504_v16  ;;  %v510_v21 = vadd.f32 %v507_v14, %v505_v17  ;;  %v511_v22 = vadd.f32 %v507_v14, %v506_v18 }
 0x204   :  { %vm577_vm10 = vcmp.ne.s32.totalorder %v527_v27, 15 }
 0x205   :  { %933 = vtanh.f32 %v508_v19  ;;  %v909_v8 = vsel %vm577_vm10, 1.0, %v952_v30 }
 0x206   :  { %935 = vtanh.f32 %v509_v20 }
 0x207   :  { %937 = vtanh.f32 %v510_v21 }
 0x208   :  { %939 = vtanh.f32 %v511_v22 }
 0x20b   :  { %v934_v0 = vpop.eup %933 }
 0x20c   :  { %v936_v26 = vpop.eup %935  ;;  %707 = vmatmul.f32.vlgmr.msrb.gmra.mxu1 %v934_v0  ;;  %v601_v25 = vrot.slane %v934_v0, 1  ;;  %v588_v24 = vrot.slane %v934_v0, 7 }
 0x20d   :  { %v938_v38 = vpop.eup %937  ;;  %v602_v23 = vrot.slane %v936_v26, 1  ;;  %v589_v42 = vrot.slane %v936_v26, 7 }
 0x20e   :  { %v940_v28 = vpop.eup %939  ;;  %v603_v34 = vrot.slane %v938_v38, 1  ;;  %v590_v46 = vrot.slane %v938_v38, 7 }
 0x20f   :  { %v608_v29 = vsel %vm605_vm7, %v601_v25, %v602_v23  ;;  %v591_v32 = vrot.slane %v940_v28, 7  ;;  %v595_v44 = vsel %vm592_vm9, %v588_v24, %v589_v42  ;;  %v604_v45 = vrot.slane %v940_v28, 1 }
 0x210   :  { %736 = vmatmul.f32.vlgmr.msrb.gmra.mxu0 %v608_v29  ;;  %v607_v39 = vsel %vm605_vm7, %v602_v23, %v603_v34  ;;  %v594_v50 = vsel %vm592_vm9, %v589_v42, %v590_v46 }
 0x211   :  { %v596_v36 = vsel %vm592_vm9, %v591_v32, %v588_v24  ;;  %v611_v40 = vmul.f32 %v909_v8, %v607_v39  ;;  %v606_v48 = vsel %vm605_vm7, %v603_v34, %v604_v45  ;;  %v599_v7 = vmul.f32 %v908_v49, %v594_v50 }
 0x212   :  { %v597_v37 = vmul.f32 %v907_v31, %v596_v36  ;;  %v609_v52 = vsel %vm605_vm7, %v604_v45, %v601_v25  ;;  %v593_v6 = vsel %vm592_vm9, %v590_v46, %v591_v32 }
 0x213   :  { %v613_v53 = vmul.f32 %v910_v51, %v609_v52 }
 0x214   :  { %678 = vmatmul.f32.vlgmr.msrb.gmra.mxu3 %v597_v37  ;;  %710 = vmatmul.f32.gmra.mxu1 %v936_v26 }
 0x218   :  { %739 = vmatmul.f32.gmra.mxu0 %v611_v40 }
 0x21c   :  { %681 = vmatmul.f32.gmra.mxu3 %v595_v44  ;;  %713 = vmatmul.f32.gmra.mxu1 %v938_v38 }
 0x220   :  { %742 = vmatmul.f32.gmra.mxu0 %v606_v48  ;;  %v749_v48 = vld [vmem:[%s1559_s5] sm:$0x1] }
 0x224   :  { %684 = vmatmul.f32.gmra.mxu3 %v599_v7  ;;  %716 = vmatmul.f32.gmra.mxu1 %v940_v28  ;;  %v750_v7 = vld [vmem:[%s1560_s6] sm:$0x1] }
 0x228   :  { %745 = vmatmul.f32.gmra.mxu0 %v613_v53 }
 0x22c   :  { %687 = vmatmul.f32.gmra.mxu3 %v593_v6 }
 0x289   :  { %v708_v54 = vpop.f32.mrf.mxu1 }
 0x28d   :  { %v737_v55 = vpop.f32.mrf.mxu0 }
 0x291   :  { %v711_v57 = vpop.f32.mrf.mxu1 }
 0x295   :  { %v740_v58 = vpop.f32.mrf.mxu0 }
 0x297   :  { %v679_v56 = vpop.f32.mrf.mxu3 }
 0x298   :  { %v709_v1 = vadd.f32 %v708_v54, %v679_v56 }
 0x299   :  { %v714_v60 = vpop.f32.mrf.mxu1 }
 0x29a   :  { %v1517_v3 = vadd.f32 %v737_v55, %v709_v1 }
 0x29c   :  { %v760_v10 = vmul.f32 %v1517_v3, %v1517_v3 }
 0x29d   :  { %v743_v62 = vpop.f32.mrf.mxu0 }
 0x29f   :  { %v682_v59 = vpop.f32.mrf.mxu3 }
 0x2a0   :  { %v712_v61 = vadd.f32 %v711_v57, %v682_v59 }
 0x2a1   :  { %v717_v5 = vpop.f32.mrf.mxu1 }
 0x2a2   :  { %v1515_v35 = vadd.f32 %v740_v58, %v712_v61 }
 0x2a4   :  { %v761_v33 = vmul.f32 %v1515_v35, %v1515_v35  ;;  %v751_v11 = vadd.f32 %v1515_v35, %v1517_v3 }
 0x2a5   :  { %v746_v14 = vpop.f32.mrf.mxu0 }
 0x2a6   :  { %v764_v15 = vadd.f32 %v761_v33, %v760_v10 }
 0x2a7   :  { %v685_v63 = vpop.f32.mrf.mxu3 }
 0x2a8   :  { %v715_v2 = vadd.f32 %v714_v60, %v685_v63 }
 0x2aa   :  { %v1519_v4 = vadd.f32 %v743_v62, %v715_v2 }
 0x2ac   :  { %v762_v12 = vmul.f32 %v1519_v4, %v1519_v4  ;;  %v752_v16 = vadd.f32 %v751_v11, %v1519_v4 }
 0x2ae   :  { %v765_v18 = vadd.f32 %v764_v15, %v762_v12 }
 0x2af   :  { %v688_v9 = vpop.f32.mrf.mxu3 }
 0x2b0   :  { %v718_v13 = vadd.f32 %v717_v5, %v688_v9 }
 0x2b2   :  { %v747_v17 = vadd.f32 %v746_v14, %v718_v13 }
 0x2b4   :  { %v753_v19 = vadd.f32 %v752_v16, %v747_v17  ;;  %v763_v20 = vmul.f32 %v747_v17, %v747_v17 }
 0x2b6   :  { %v754_v21 = vrot.slane %v753_v19, 4  ;;  %v766_v22 = vadd.f32 %v765_v18, %v763_v20 }
 0x2b8   :  { %v755_v41 = vadd.f32 %v754_v21, %v753_v19  ;;  %v767_v0 = vrot.slane %v766_v22, 4 }
 0x2ba   :  { %v756_v26 = vrot.slane %v755_v41, 2  ;;  %v768_v25 = vadd.f32 %v767_v0, %v766_v22 }
 0x2bc   :  { %v757_v27 = vadd.f32 %v756_v26, %v755_v41  ;;  %v769_v38 = vrot.slane %v768_v25, 2 }
 0x2be   :  { %v758_v23 = vrot.slane %v757_v27, 1  ;;  %v770_v24 = vadd.f32 %v769_v38, %v768_v25 }
 0x2c0   :  { %v771_v28 = vrot.slane %v770_v24, 1  ;;  %v759_v29 = vadd.f32 %v758_v23, %v757_v27 }
 0x2c2   :  { %v772_v30 = vadd.f32 %v771_v28, %v770_v24 }
 0x2c4   :  { %v773_v31 = vsel %vm427_vm1, %v759_v29, %v772_v30 }
 0x2c5   :  { %790 = vmatmul.f32.vlgmr.msrb.gmra.mxu2 %v773_v31 }
 0x348   :  { %v791_v32 = vpop.f32.mrf.mxu2 }
 0x349   :  { %v794_v34 = vmul.f32 0.001953125, %v791_v32 }
 0x34b   :  { %v795_v36 = vmul.f32 %v794_v34, %v794_v34 }
 0x34d   :  { %v797_v37 = vrot.slane %v795_v36, 7 }
 0x34f   :  { %v799_v8 = vsub.f32 %v794_v34, %v797_v37 }
 0x351   :  { %v800_v39 = vadd.f32 1e-05, %v799_v8 }
 0x353   :  { %941 = vrsqrt.f32 %v800_v39  ;;  %vm807_vm14 = vweird.f32 %v800_v39 }
 0x359   :  { %v942_v40 = vpop.eup %941 }
 0x35a   :  { %v802_v42 = vmul.f32 %v942_v40, %v800_v39  ;;  %vm808_vm13 = vweird.f32 %v942_v40 }
 0x35b   :  { %vm809_vm15 = vmor %vm807_vm14, %vm808_vm13 }
 0x35c   :  { %v803_v43 = vmul.f32 %v942_v40, %v802_v42 }
 0x35e   :  { %v804_v44 = vmul.f32 0.5, %v803_v43 }
 0x360   :  { %v805_v45 = vsub.f32 1.5, %v804_v44 }
 0x362   :  { %v806_v46 = vmul.f32 %v942_v40, %v805_v45 }
 0x364   :  { %v810_v47 = vsel %vm809_vm15, %v942_v40, %v806_v46 }
 0x365   :  { %812 = vst [vmem:[#allocation1] sm:$0xff] %v810_v47 }
 0x36c   :  { %v814_v49 = vld [vmem:[#allocation1 + $0x1] ss:$9 sm:$0xff] }
 0x36d   :  { %v816_v50 = vmul.f32 %v814_v49, %v749_v48 }
 0x36f   :  { %v817_v51 = vmul.f32 %v816_v50, %v794_v34 }
 0x371   :  { %v818_v52 = vsub.f32 %v750_v7, %v817_v51 }
 0x373   :  { %v820_v53 = vperm.slane %v818_v52, 0 }
 0x375   :  { %v822_v6 = vsel %vm427_vm1, %v816_v50, %v820_v53 }
 0x376   :  { %928 = vmatmul.msk.f32.vlgmr.msra.gmra.mxu3 %vm478_vm6, %v822_v6 }
 0x3f9   :  { %v843_v54 = vpop.f32.mrf.mxu3 }
 0x3fa   :  { %v846_v55 = vperm.slane %v843_v54, 0  ;;  %v851_v56 = vperm.slane %v843_v54, 1 }
 0x3fc   :  { %v847_v57 = vmul.f32 %v846_v55, %v1517_v3  ;;  %v848_v58 = vmul.f32 %v846_v55, %v1515_v35  ;;  %v849_v59 = vmul.f32 %v846_v55, %v1519_v4  ;;  %v850_v60 = vmul.f32 %v846_v55, %v747_v17 }
 0x3fe   :  { %v852_v61 = vadd.f32 %v851_v56, %v847_v57  ;;  %v853_v62 = vadd.f32 %v851_v56, %v848_v58  ;;  %v854_v63 = vadd.f32 %v851_v56, %v849_v59  ;;  %v855_v1 = vadd.f32 %v851_v56, %v850_v60 }
 0x400   :  { %943 = vtanh.f32 %v852_v61 }
 0x401   :  { %945 = vtanh.f32 %v853_v62 }
 0x402   :  { %947 = vtanh.f32 %v854_v63 }
 0x403   :  { %949 = vtanh.f32 %v855_v1 }
 0x406   :  { %v944_v2 = vpop.eup %943 }
 0x407   :  { %v946_v33 = vpop.eup %945  ;;  %860 = vst [vmem:[%s1561_s7] sm:$0xff] %v944_v2 }
 0x408   :  { %v948_v3 = vpop.eup %947  ;;  %861 = vst [vmem:[%s1561_s7 + $0x8] sm:$0xff] %v946_v33 }
 0x409   :  { %v950_v35 = vpop.eup %949  ;;  %862 = vst [vmem:[%s1561_s7 + $0x10] sm:$0xff] %v948_v3 }
 0x40a   :  { %863 = vst [vmem:[%s1561_s7 + $0x18] sm:$0xff] %v950_v35 }

</bundles_post_ra>
